<compile_context>
chip_gen: v6e
topology: v6e:2x2x1
jax: 0.10.0
libtpu: 0.0.40
codegen_flags: <defaults>
</compile_context>

<pallas_src>
import jax
import jax.numpy as jnp
from jax.experimental import pallas as pl
from jax.experimental.pallas import tpu as pltpu


def fc_linear_kernel(x_ref, w_ref, b_ref, a_ref, o_ref):
    # x_ref: (TB, C, HW) feature tile (C on sublanes, HW on lanes).
    # Global average pool == sum over the lane axis; the 1/HW scale is already
    # folded into w_ref by the wrapper.  Accumulate in f32 even for bf16 input.
    x = x_ref[...].astype(jnp.float32)
    pooled = jnp.sum(x, axis=-1)                                  # (TB, C)  XLU lane reduce

    # Linear: pooled @ (W^T / HW) + b  on the MXU (bf16 native when features are bf16).
    y = jnp.dot(pooled.astype(w_ref.dtype), w_ref[...],
                preferred_element_type=jnp.float32)               # (TB, R) f32
    y = y + b_ref[...]                                            # (1, R) broadcast

    # PReLU with a single learnable alpha (read from SMEM scalar path).
    a = a_ref[0]
    o_ref[...] = jnp.where(y >= 0.0, y, a * y).astype(o_ref.dtype)


def _pick_batch_tile(B, C, HW, itemsize, budget_bytes=24 << 20):
    """Largest batch tile (multiple of 8, <=512) whose double-buffered feature
    block fits in `budget_bytes`; use the whole batch if it fits in one tile."""
    per_row = max(1, 2 * C * HW * itemsize)      # double-buffered bytes per batch row
    tb = budget_bytes // per_row
    tb = int(max(8, min(512, tb)))
    tb -= tb % 8
    if tb >= B:
        return B                                  # block == full array dim (always legal)
    return tb


def resnet_fc_linear_forward(x_nchw, weight, bias, alpha, *, batch_tile=None):
    """x_nchw: (B, C, H, W) resnet output feature map (NCHW, f32 or bf16).
    weight: (rnn_size, fc_feat_size)   bias: (rnn_size,)   alpha: PReLU scalar."""
    # TODO(synk): the resnet backbone is an external module injected via __init__;
    # it is not re-implemented here — x_nchw stands for its output feature map.
    B, C, H, W = x_nchw.shape
    R = weight.shape[0]
    HW = H * W

    # (B, C, H, W) -> (B, C, HW): contiguous merge of trailing dims, no HBM transpose.
    x = x_nchw.reshape(B, C, HW)
    feat_dtype = x.dtype
    compute_dtype = jnp.bfloat16 if feat_dtype == jnp.bfloat16 else jnp.float32

    # Fold 1/HW into the (small) weight once, wrapper-side.
    w_t = (weight.T.astype(jnp.float32) / float(HW)).astype(compute_dtype)   # (C, R)
    b = bias.reshape(1, R).astype(jnp.float32)                               # (1, R)
    a = jnp.asarray(alpha, jnp.float32).reshape(1)                           # (1,) in SMEM

    # Batch tiling.
    itemsize = jnp.dtype(feat_dtype).itemsize
    tb = batch_tile if batch_tile is not None else _pick_batch_tile(B, C, HW, itemsize)
    if tb >= B:
        tb = B
    elif tb % 8 != 0:
        raise ValueError("batch_tile must be a multiple of 8 when it tiles the batch")
    grid = (pl.cdiv(B, tb),)

    # VMEM budget: double-buffered feature tile + resident weight/bias + output tile.
    feat_block_bytes = tb * C * HW * itemsize
    w_bytes = C * R * jnp.dtype(compute_dtype).itemsize
    vmem_needed = (2 * feat_block_bytes + 2 * w_bytes + 2 * (R * 4)
                   + 2 * (tb * R * 4) + (4 << 20))
    vmem_limit = int(min(max(vmem_needed, 16 << 20), 48 << 20))

    return pl.pallas_call(
        fc_linear_kernel,
        out_shape=jax.ShapeDtypeStruct((B, R), jnp.float32),
        grid=grid,
        in_specs=[
            pl.BlockSpec((tb, C, HW), lambda i: (i, 0, 0)),       # feature tile (pipelined)
            pl.BlockSpec((C, R), lambda i: (0, 0)),               # weight (resident)
            pl.BlockSpec((1, R), lambda i: (0, 0)),               # bias (resident)
            pl.BlockSpec(memory_space=pltpu.MemorySpace.SMEM),    # PReLU alpha (scalar)
        ],
        out_specs=pl.BlockSpec((tb, R), lambda i: (i, 0)),
        compiler_params=pltpu.CompilerParams(
            dimension_semantics=("parallel",),
            vmem_limit_bytes=vmem_limit,
        ),
    )(x, w_t, b, a)


if __name__ == "__main__":
    key = jax.random.PRNGKey(0)
    # Small, forward-consistent shapes:
    #   B = 16 batch, C = fc_feat_size = 128, H = W = pool_size = 8, rnn_size = 128
    B, C, H, W = 16, 128, 8, 8
    R = 128

    k_x, k_w, k_b = jax.random.split(key, 3)
    x = jax.random.normal(k_x, (B, C, H, W), dtype=jnp.float32)

    # linear1.weight: xavier_normal init, shape (rnn_size, fc_feat_size)
    xavier_std = (2.0 / (C + R)) ** 0.5
    weight = xavier_std * jax.random.normal(k_w, (R, C), dtype=jnp.float32)
    # linear1.bias: PyTorch default U(-1/sqrt(fan_in), 1/sqrt(fan_in))
    bound = 1.0 / (C ** 0.5)
    bias = jax.random.uniform(k_b, (R,), minval=-bound, maxval=bound, dtype=jnp.float32)
    # PReLU default single parameter, init 0.25
    alpha = jnp.float32(0.25)

    # Pure-JAX reference of the same semantics.
    pooled_ref = jnp.mean(x.reshape(B, C, H * W), axis=-1)        # avg_pool2d + squeeze
    y_ref = pooled_ref @ weight.T + bias
    ref = jnp.where(y_ref >= 0, y_ref, alpha * y_ref)

    # f32 feature path; batch_tile=8 exercises a 2-step pipelined batch grid.
    out = resnet_fc_linear_forward(x, weight, bias, alpha, batch_tile=8)
    out = jax.block_until_ready(out)
    assert out.shape == (B, R)
    assert jnp.allclose(out, ref, atol=1e-4, rtol=1e-4), "f32 mismatch vs reference"

    # bf16 feature path (halved HBM read traffic); f32 accumulation inside the kernel.
    out_bf16 = resnet_fc_linear_forward(
        x.astype(jnp.bfloat16), weight, bias, alpha, batch_tile=8)
    out_bf16 = jax.block_until_ready(out_bf16)
    assert jnp.allclose(out_bf16, ref, atol=5e-2, rtol=5e-2), "bf16 mismatch vs reference"

    print("KERNEL_OK")
</pallas_src>

<mosaic_0001>
module attributes {stable_mosaic.version = 11 : i64} {
  func.func @fc_linear_kernel(%arg0: i32, %arg1: memref<8x128x64xf32, #tpu.memory_space<vmem>>, %arg2: memref<128x128xf32, #tpu.memory_space<vmem>>, %arg3: memref<1x128xf32, #tpu.memory_space<vmem>>, %arg4: memref<1xf32, #tpu.memory_space<smem>>, %arg5: memref<8x128xf32, #tpu.memory_space<vmem>>) attributes {dimension_semantics = [#tpu.dimension_semantics<parallel>], iteration_bounds = array<i64: 2>, scalar_prefetch = 0 : i64, scratch_operands = 0 : i64, tpu.core_type = #tpu.core_type<tc>, window_params = [{transform_indices = @transform_0, window_bounds = array<i64: 8, 128, 64>}, {pipeline_mode = #tpu.pipeline_mode<synchronous>, transform_indices = @transform_1, window_bounds = array<i64: 128, 128>}, {pipeline_mode = #tpu.pipeline_mode<synchronous>, transform_indices = @transform_2, window_bounds = array<i64: 1, 128>}, {transform_indices = @transform_3, window_bounds = array<i64: 1>}, {transform_indices = @transform_4, window_bounds = array<i64: 8, 128>}]} {
    %c0 = arith.constant 0 : index
    %c0_0 = arith.constant 0 : index
    %c0_1 = arith.constant 0 : index
    %0 = vector.load %arg1[%c0, %c0_0, %c0_1] : memref<8x128x64xf32, #tpu.memory_space<vmem>>, vector<8x128x64xf32>
    %cst = arith.constant dense<0.000000e+00> : vector<8x128xf32>
    %1 = vector.multi_reduction <add>, %0, %cst [2] : vector<8x128x64xf32> to vector<8x128xf32>
    %c0_2 = arith.constant 0 : index
    %c0_3 = arith.constant 0 : index
    %2 = vector.load %arg2[%c0_2, %c0_3] : memref<128x128xf32, #tpu.memory_space<vmem>>, vector<128x128xf32>
    %cst_4 = arith.constant dense<0.000000e+00> : vector<8x128xf32>
    %3 = tpu.matmul %1, %2, %cst_4 {dimension_numbers = #tpu.dot_dimension_numbers<[1], [0], [0], [1], [0, 0, 1, 1], [], []>} : vector<8x128xf32>, vector<128x128xf32>, vector<8x128xf32> -> vector<8x128xf32>
    %c0_5 = arith.constant 0 : index
    %c0_6 = arith.constant 0 : index
    %4 = vector.load %arg3[%c0_5, %c0_6] : memref<1x128xf32, #tpu.memory_space<vmem>>, vector<1x128xf32>
    %5 = vector.broadcast %4 : vector<1x128xf32> to vector<8x128xf32>
    %6 = arith.addf %3, %5 : vector<8x128xf32>
    %c0_7 = arith.constant 0 : index
    %7 = memref.load %arg4[%c0_7] : memref<1xf32, #tpu.memory_space<smem>>
    %cst_8 = arith.constant 0.000000e+00 : f32
    %8 = vector.broadcast %cst_8 : f32 to vector<8x128xf32>
    %9 = arith.cmpf oge, %6, %8 : vector<8x128xf32>
    %10 = vector.broadcast %7 : f32 to vector<8x128xf32>
    %11 = arith.mulf %10, %6 : vector<8x128xf32>
    %12 = arith.select %9, %6, %11 : vector<8x128xi1>, vector<8x128xf32>
    %c0_9 = arith.constant 0 : index
    %c0_10 = arith.constant 0 : index
    %13 = vector.load %arg5[%c0_9, %c0_10] : memref<8x128xf32, #tpu.memory_space<vmem>>, vector<8x128xf32>
    tpu.vector_store %arg5[%c0_9, %c0_10], %12 {strides = array<i32>} : memref<8x128xf32, #tpu.memory_space<vmem>>, vector<8x128xf32>,
    return
  }
  func.func @transform_0(%arg0: i32) -> (i32, i32, i32) {
    %c0_i32 = arith.constant 0 : i32
    %c0_i32_0 = arith.constant 0 : i32
    %c0_i32_1 = arith.constant 0 : i32
    return %arg0, %c0_i32, %c0_i32_0 : i32, i32, i32
  }
  func.func @transform_1(%arg0: i32) -> (i32, i32) {
    %c0_i32 = arith.constant 0 : i32
    %c0_i32_0 = arith.constant 0 : i32
    %c0_i32_1 = arith.constant 0 : i32
    return %c0_i32, %c0_i32_0 : i32, i32
  }
  func.func @transform_2(%arg0: i32) -> (i32, i32) {
    %c0_i32 = arith.constant 0 : i32
    %c0_i32_0 = arith.constant 0 : i32
    %c0_i32_1 = arith.constant 0 : i32
    return %c0_i32, %c0_i32_0 : i32, i32
  }
  func.func @transform_3(%arg0: i32) -> i32 {
    %c0_i32 = arith.constant 0 : i32
    %c0_i32_0 = arith.constant 0 : i32
    return %c0_i32 : i32
  }
  func.func @transform_4(%arg0: i32) -> (i32, i32) {
    %c0_i32 = arith.constant 0 : i32
    %c0_i32_0 = arith.constant 0 : i32
    return %arg0, %c0_i32 : i32, i32
  }
}

</mosaic_0001>

<bundles_post_ra>
// kernel: tpu_custom_call.1
= control target key start
LH: loop header
LB: loop body
LE: loop exit
PB: predicated region body
PF: predicated region fallthrough
CT: control target
= control target key end

     0   :  { %s2692_s0 = inlined_call_operand.vmem [shape: f32[16,128,64], index: 0, kind: input, shape index: {}]   ;;  %s2693_s1 = inlined_call_operand.vmem [shape: f32[128,128], index: 1, kind: input, shape index: {}]   ;;  %s2694_s2 = inlined_call_operand.vmem [shape: f32[1,128], index: 2, kind: input, shape index: {}]   ;;  %s2695_s3 = inlined_call_operand.<no memory space> [shape: f32[1], index: 3, kind: input, shape index: {}]   ;;  %s2696_s4 = inlined_call_operand.hbm [shape: f32[16,128], index: 4, kind: output, shape index: {}]  }
   0x1   :  { %9 = sst [smem:[#allocation2]] %s2695_s3 }
   0x2   :  { %10 = vsyncpa [#allocation4], 0 }
   0x3   :  { %12 = vsyncpa [#allocation4 + $0x1], 0  ;;  %s1894_s17 = smov 0   ;;  %s1896_s18 = smov 0  }
   0x4   :  { %s1898_s19 = smov 0   ;;  %s1900_s20 = smov 0  }
   0x5 LB: > { %s1915_s3 = sadd.s32 4294967295, %s1861_s20   ;;  %s1694_s21 = sadd.s32 4294967294, %s1861_s20   ;;  %s1861_s20 = sphi %s1900_s20, %s2702_s20   ;;  %s1857_s19 = sphi %s1898_s19, %s2701_s19   ;;  %s1853_s18 = sphi %s1896_s18, %s2700_s18   ;;  %s1849_s17 = sphi %s1894_s17, %s2699_s17  }
   0x6   : > { %s1919_s22 = sadd.s32 1, %s1861_s20   ;;  %s114_s23 = sadd.s32 1, %s1857_s19 }
   0x7   : > { %s111_s24 = ssub.s32 %s1861_s20, %s1919_s22  ;;  %p124_p0 = scmp.ne.s32.totalorder %s1857_s19, %s1853_s18 }
   0x8   : > { %p112_p1 = scmp.eq.s32.totalorder %s111_s24, 0  ;;  %p125_p2 = scmp.eq.s32.totalorder %s1915_s3, 1 }
   0x9   : > { %p130_p3 = scmp.ne.s32.totalorder %s1853_s18, %s1849_s17  ;;  %p131_p4 = scmp.eq.s32.totalorder %s1694_s21, 1 }
   0xa   : > { %s1930_s25 = scalar_select %p112_p1, %s1857_s19, %s114_s23  }
   0xb   : > { %p1932_p5 = por %p125_p2, %p124_p0  ;;  %p1936_p6 = por %p131_p4, %p130_p3 }
   0xc   : > { %p1697_p7 = scmp.ge.s32.totalorder %s1861_s20, 1  ;;  %p168_p8 = scmp.lt.s32.totalorder %s1861_s20, 3 }
   0xe   : > { %p169_p9 = pnand %p1697_p7, %p168_p8 }
   0xf   : > { %s1699_s28 = sshll.u32 (!%p169_p9), %s1915_s3, 3  ;;  %s192_s30 = sand.u32 (!%p169_p9), 1, %s1853_s18  }
  0x10   : > { %172 = sbr.rel (%p169_p9) target bundleno = 633 (0x279), region = 36  ;;  %p196_p10 = scmp.lt.s32.totalorder (!%p169_p9), %s1699_s28, 15 }
  0x11   : > { %s1698_s5 = sshll.u32 (!%p169_p9), %s192_s30, 3  ;;  %s1704_s8 = sshll.u32 (!%p169_p9), %s1915_s3, 7 }
  0x12   : > { %s194_s9 = scalar_lea.vmem (!%p169_p9), [#allocation3], %s1698_s5  ;;  %s2657_s13 = scalar_lea.hbm (!%p169_p9), %s2696_s4, %s1704_s8 }
  0x13   : > { %s1635_s10 = sshll.u32 (!%p169_p9), %s194_s9, 4  ;;  %s1622_s14 = scalar_lea.sflag (!%p169_p9), [#allocation4], %s192_s30  ;;  %s1636_s10 = int_to_ptr.vmem [resolvable:$true] %s1635_s10 }
  0x14   : > { %s1801_s15 = scalar_lea.vmem (!%p169_p9), %s1636_s10, 128  ;;  %s1865_s3 = smov (!%p169_p9), [#allocation3]  }
  0x15   : > { %s2704_s28 = smov (!%p196_p10, %s1699_s28), 15  ;;  %vm330_vm0 = vcmask 523264   ;;  %vm877_vm1 = vcmask 130112   ;;  %vm884_vm2 = vcmask 195712   ;;  %vm891_vm3 = vcmask 261312   ;;  %p1802_p11 = scmp.ne.s32.totalorder %s1636_s10, %s1801_s15 }
  0x16   : > { %s1707_s29 = sshll.u32 %s2704_s28, 7  ;;  %vm898_vm4 = vcmask 326912   ;;  %vm905_vm5 = vcmask 392512   ;;  %vm912_vm6 = vcmask 458112   ;;  %vm919_vm7 = vcmask 523712   ;;  %s1805_s16 = sshll.u32 %s1865_s3, 4  ;;  %s1806_s16 = int_to_ptr.vmem [resolvable:$false] %s1805_s16 }
  0x17   : > { %s1946_s6 = scalar_lea.vmem %s2692_s0, %s1707_s29  ;;  %vm926_vm8 = vcmask 589312   ;;  %vm933_vm9 = vcmask 654912   ;;  %vm940_vm10 = vcmask 720512   ;;  %vm1864_vm11 = vmmov 0   ;;  %s1615_s29 = sld [smem:[#allocation2]] }
  0x18   : > { %v218_v0 = vld [vmem:[%s1946_s6 + $0x80] sm:$0xff]  ;;  %v219_v2 = vld [vmem:[%s1946_s6 + $0x88] sm:$0xff]  ;;  %v220_v8 = vld [vmem:[%s1946_s6 + $0x90] sm:$0xff]  ;;  %vm947_vm12 = vcmask 786112   ;;  %vm954_vm13 = vcmask 851712   ;;  %vm961_vm14 = vcmask 917312   ;;  %p1803_p12 = pnand %p1802_p11, %p1932_p5  ;;  %p1808_p0 = scmp.lt.s32.totalorder %s1636_s10, %s1806_s16 }
  0x19   : > { %v202_v1 = vld [vmem:[%s1946_s6] sm:$0xff]  ;;  %v379_v3 = vsel %vm330_vm0, %v218_v0, 0.0  ;;  %v203_v5 = vld [vmem:[%s1946_s6 + $0x8] sm:$0xff]  ;;  %v382_v6 = vsel %vm330_vm0, %v219_v2, 0.0  ;;  %v204_v9 = vld [vmem:[%s1946_s6 + $0x10] sm:$0xff]  ;;  %v385_v10 = vsel %vm330_vm0, %v220_v8, 0.0 }
  0x1a   : > { %v331_v4 = vsel %vm330_vm0, %v202_v1, 0.0  ;;  %380 = vadd.xlane.f32.xlu1 %v379_v3  ;;  %v334_v7 = vsel %vm330_vm0, %v203_v5, 0.0  ;;  %v337_v11 = vsel %vm330_vm0, %v204_v9, 0.0  ;;  %v235_v12 = vld [vmem:[%s1946_s6 + $0x108] sm:$0xff]  ;;  %v234_v13 = vld [vmem:[%s1946_s6 + $0x100] sm:$0xff]  ;;  %v221_v16 = vld [vmem:[%s1946_s6 + $0x98] sm:$0xff]  ;;  %p1804_p13 = pneg %p1803_p12 }
  0x1b   : > { %332 = vadd.xlane.f32.xlu0 %v331_v4  ;;  %v430_v14 = vsel %vm330_vm0, %v235_v12, 0.0  ;;  %v427_v15 = vsel %vm330_vm0, %v234_v13, 0.0  ;;  %v205_v17 = vld [vmem:[%s1946_s6 + $0x18] sm:$0xff]  ;;  %v388_v18 = vsel %vm330_vm0, %v221_v16, 0.0  ;;  %v250_v20 = vld [vmem:[%s1946_s6 + $0x180] sm:$0xff]  ;;  %v236_v21 = vld [vmem:[%s1946_s6 + $0x110] sm:$0xff] }
  0x1c   : > { %v340_v19 = vsel %vm330_vm0, %v205_v17, 0.0  ;;  %v475_v22 = vsel %vm330_vm0, %v250_v20, 0.0  ;;  %v433_v23 = vsel %vm330_vm0, %v236_v21, 0.0  ;;  %v206_v24 = vld [vmem:[%s1946_s6 + $0x20] sm:$0xff]  ;;  %v251_v25 = vld [vmem:[%s1946_s6 + $0x188] sm:$0xff]  ;;  %v237_v28 = vld [vmem:[%s1946_s6 + $0x118] sm:$0xff] }
  0x1d   : > { %v343_v26 = vsel %vm330_vm0, %v206_v24, 0.0  ;;  %v478_v27 = vsel %vm330_vm0, %v251_v25, 0.0  ;;  %v222_v29 = vld [vmem:[%s1946_s6 + $0xa0] sm:$0xff]  ;;  %v436_v30 = vsel %vm330_vm0, %v237_v28, 0.0  ;;  %v252_v33 = vld [vmem:[%s1946_s6 + $0x190] sm:$0xff]  ;;  %v207_v36 = vld [vmem:[%s1946_s6 + $0x28] sm:$0xff] }
  0x1e   : > { %383 = vadd.xlane.f32.xlu1 %v382_v6  ;;  %v391_v31 = vsel %vm330_vm0, %v222_v29, 0.0  ;;  %v266_v32 = vld [vmem:[%s1946_s6 + $0x200] sm:$0xff]  ;;  %v481_v35 = vsel %vm330_vm0, %v252_v33, 0.0  ;;  %v267_v37 = vld [vmem:[%s1946_s6 + $0x208] sm:$0xff]  ;;  %v346_v38 = vsel %vm330_vm0, %v207_v36, 0.0  ;;  %v268_v44 = vld [vmem:[%s1946_s6 + $0x210] sm:$0xff] }
  0x1f   : > { %335 = vadd.xlane.f32.xlu0 %v334_v7  ;;  %v523_v34 = vsel %vm330_vm0, %v266_v32, 0.0  ;;  %v526_v39 = vsel %vm330_vm0, %v267_v37, 0.0  ;;  %v238_v40 = vld [vmem:[%s1946_s6 + $0x120] sm:$0xff]  ;;  %v223_v41 = vld [vmem:[%s1946_s6 + $0xa8] sm:$0xff]  ;;  %v253_v45 = vld [vmem:[%s1946_s6 + $0x198] sm:$0xff]  ;;  %v529_v46 = vsel %vm330_vm0, %v268_v44, 0.0 }
  0x20   : > { %v439_v42 = vsel %vm330_vm0, %v238_v40, 0.0  ;;  %v394_v43 = vsel %vm330_vm0, %v223_v41, 0.0  ;;  %v484_v47 = vsel %vm330_vm0, %v253_v45, 0.0  ;;  %v283_v48 = vld [vmem:[%s1946_s6 + $0x288] sm:$0xff]  ;;  %v282_v49 = vld [vmem:[%s1946_s6 + $0x280] sm:$0xff]  ;;  %v224_v52 = vld [vmem:[%s1946_s6 + $0xb0] sm:$0xff] }
  0x21   : > { %v574_v50 = vsel %vm330_vm0, %v283_v48, 0.0  ;;  %v571_v51 = vsel %vm330_vm0, %v282_v49, 0.0  ;;  %v208_v53 = vld [vmem:[%s1946_s6 + $0x30] sm:$0xff]  ;;  %v397_v54 = vsel %vm330_vm0, %v224_v52, 0.0  ;;  %v254_v56 = vld [vmem:[%s1946_s6 + $0x1a0] sm:$0xff]  ;;  %v239_v57 = vld [vmem:[%s1946_s6 + $0x128] sm:$0xff] }
  0x22   : > { %386 = vadd.xlane.f32.xlu1 %v385_v10  ;;  %v349_v55 = vsel %vm330_vm0, %v208_v53, 0.0  ;;  %v487_v58 = vsel %vm330_vm0, %v254_v56, 0.0  ;;  %v442_v59 = vsel %vm330_vm0, %v239_v57, 0.0  ;;  %v284_v60 = vld [vmem:[%s1946_s6 + $0x290] sm:$0xff]  ;;  %v269_v61 = vld [vmem:[%s1946_s6 + $0x218] sm:$0xff]  ;;  %v299_v0 = vld [vmem:[%s1946_s6 + $0x308] sm:$0xff] }
  0x23   : > { %338 = vadd.xlane.f32.xlu0 %v337_v11  ;;  %v577_v62 = vsel %vm330_vm0, %v284_v60, 0.0  ;;  %v532_v63 = vsel %vm330_vm0, %v269_v61, 0.0  ;;  %v298_v1 = vld [vmem:[%s1946_s6 + $0x300] sm:$0xff]  ;;  %v622_v2 = vsel %vm330_vm0, %v299_v0, 0.0  ;;  %v225_v4 = vld [vmem:[%s1946_s6 + $0xb8] sm:$0xff]  ;;  %v255_v8 = vld [vmem:[%s1946_s6 + $0x1a8] sm:$0xff] }
  0x24   : > { %v619_v3 = vsel %vm330_vm0, %v298_v1, 0.0  ;;  %v209_v5 = vld [vmem:[%s1946_s6 + $0x38] sm:$0xff]  ;;  %v400_v6 = vsel %vm330_vm0, %v225_v4, 0.0  ;;  %v240_v9 = vld [vmem:[%s1946_s6 + $0x130] sm:$0xff]  ;;  %v490_v10 = vsel %vm330_vm0, %v255_v8, 0.0  ;;  %v270_v13 = vld [vmem:[%s1946_s6 + $0x220] sm:$0xff] }
  0x25   : > { %v352_v7 = vsel %vm330_vm0, %v209_v5, 0.0  ;;  %v445_v11 = vsel %vm330_vm0, %v240_v9, 0.0  ;;  %v285_v12 = vld [vmem:[%s1946_s6 + $0x298] sm:$0xff]  ;;  %v314_v16 = vld [vmem:[%s1946_s6 + $0x380] sm:$0xff]  ;;  %v300_v17 = vld [vmem:[%s1946_s6 + $0x310] sm:$0xff]  ;;  %vm968_vm15 = vcmask 982912  }
  0x26   : > { %431 = vadd.xlane.f32.xlu1 %v430_v14  ;;  %v580_v14 = vsel %vm330_vm0, %v285_v12, 0.0  ;;  %v210_v20 = vld [vmem:[%s1946_s6 + $0x40] sm:$0xff]  ;;  %v315_v21 = vld [vmem:[%s1946_s6 + $0x388] sm:$0xff]  ;;  %v241_v24 = vld [vmem:[%s1946_s6 + $0x138] sm:$0xff]  ;;  %s1807_s21 = scalar_lea.vmem %s1806_s16, 256 }
  0x27   : > { %428 = vadd.xlane.f32.xlu0 %v427_v15  ;;  %v535_v15 = vsel %vm330_vm0, %v270_v13, 0.0  ;;  %v226_v25 = vld [vmem:[%s1946_s6 + $0xc0] sm:$0xff]  ;;  %v271_v28 = vld [vmem:[%s1946_s6 + $0x228] sm:$0xff]  ;;  %v256_v29 = vld [vmem:[%s1946_s6 + $0x1b0] sm:$0xff]  ;;  %p1809_p1 = scmp.lt.s32.totalorder %s1807_s21, %s1801_s15 }
  0x28   : > { %v301_v32 = vld [vmem:[%s1946_s6 + $0x318] sm:$0xff]  ;;  %v286_v33 = vld [vmem:[%s1946_s6 + $0x2a0] sm:$0xff]  ;;  %v211_v36 = vld [vmem:[%s1946_s6 + $0x48] sm:$0xff] }
  0x29   : > { %v316_v37 = vld [vmem:[%s1946_s6 + $0x390] sm:$0xff]  ;;  %v242_v40 = vld [vmem:[%s1946_s6 + $0x140] sm:$0xff]  ;;  %v227_v41 = vld [vmem:[%s1946_s6 + $0xc8] sm:$0xff]  ;;  %p1810_p2 = por %p1809_p1, %p1808_p0 }
  0x2a   : > { %389 = vadd.xlane.f32.xlu1 %v388_v18  ;;  %v667_v18 = vsel %vm330_vm0, %v314_v16, 0.0  ;;  %v272_v44 = vld [vmem:[%s1946_s6 + $0x230] sm:$0xff]  ;;  %v257_v45 = vld [vmem:[%s1946_s6 + $0x1b8] sm:$0xff]  ;;  %v302_v48 = vld [vmem:[%s1946_s6 + $0x320] sm:$0xff] }
  0x2b   : > { %341 = vadd.xlane.f32.xlu0 %v340_v19  ;;  %v625_v19 = vsel %vm330_vm0, %v300_v17, 0.0  ;;  %v287_v49 = vld [vmem:[%s1946_s6 + $0x2a8] sm:$0xff]  ;;  %v212_v52 = vld [vmem:[%s1946_s6 + $0x50] sm:$0xff]  ;;  %v317_v53 = vld [vmem:[%s1946_s6 + $0x398] sm:$0xff]  ;;  %p1811_p3 = pnand %p1810_p2, %p1804_p13 }
  0x2c   : > { %v243_v56 = vld [vmem:[%s1946_s6 + $0x148] sm:$0xff]  ;;  %v228_v57 = vld [vmem:[%s1946_s6 + $0xd0] sm:$0xff]  ;;  %v273_v60 = vld [vmem:[%s1946_s6 + $0x238] sm:$0xff] }
  0x2d   : > { %v258_v61 = vld [vmem:[%s1946_s6 + $0x1c0] sm:$0xff]  ;;  %v303_v0 = vld [vmem:[%s1946_s6 + $0x328] sm:$0xff]  ;;  %v288_v1 = vld [vmem:[%s1946_s6 + $0x2b0] sm:$0xff] }
  0x2e   : > { %476 = vadd.xlane.f32.xlu1 %v475_v22  ;;  %v355_v22 = vsel %vm330_vm0, %v210_v20, 0.0  ;;  %v213_v4 = vld [vmem:[%s1946_s6 + $0x58] sm:$0xff]  ;;  %v318_v5 = vld [vmem:[%s1946_s6 + $0x3a0] sm:$0xff]  ;;  %v244_v9 = vld [vmem:[%s1946_s6 + $0x150] sm:$0xff] }
  0x2f   : > { %434 = vadd.xlane.f32.xlu0 %v433_v23  ;;  %v670_v23 = vsel %vm330_vm0, %v315_v21, 0.0  ;;  %v679_v8 = vsel %vm330_vm0, %v318_v5, 0.0  ;;  %v457_v12 = vsel %vm330_vm0, %v244_v9, 0.0  ;;  %v259_v16 = vld [vmem:[%s1946_s6 + $0x1c8] sm:$0xff] }
  0x30   : > { %v502_v21 = vsel %vm330_vm0, %v259_v16, 0.0  ;;  %v215_v16 = vld [vmem:[%s1946_s6 + $0x68] sm:$0xff] }
  0x32   : > { %344 = vadd.xlane.f32.xlu1 %v343_v26  ;;  %v448_v26 = vsel %vm330_vm0, %v241_v24, 0.0 }
  0x33   : > { %479 = vadd.xlane.f32.xlu0 %v478_v27  ;;  %v403_v27 = vsel %vm330_vm0, %v226_v25, 0.0  ;;  %v304_v25 = vld [vmem:[%s1946_s6 + $0x330] sm:$0xff] }
  0x36   : > { %437 = vadd.xlane.f32.xlu1 %v436_v30  ;;  %v538_v30 = vsel %vm330_vm0, %v271_v28, 0.0 }
  0x37   : > { %392 = vadd.xlane.f32.xlu0 %v391_v31  ;;  %v493_v31 = vsel %vm330_vm0, %v256_v29, 0.0  ;;  %v637_v29 = vsel %vm330_vm0, %v304_v25, 0.0 }
  0x3a   : > { %524 = vadd.xlane.f32.xlu1 %v523_v34  ;;  %v628_v34 = vsel %vm330_vm0, %v301_v32, 0.0 }
  0x3b   : > { %482 = vadd.xlane.f32.xlu0 %v481_v35  ;;  %v583_v35 = vsel %vm330_vm0, %v286_v33, 0.0 }
  0x3e   : > { %347 = vadd.xlane.f32.xlu1 %v346_v38  ;;  %v358_v38 = vsel %vm330_vm0, %v211_v36, 0.0  ;;  %v214_v36 = vld [vmem:[%s1946_s6 + $0x60] sm:$0xff] }
  0x3f   : > { %527 = vadd.xlane.f32.xlu0 %v526_v39  ;;  %v673_v39 = vsel %vm330_vm0, %v316_v37, 0.0  ;;  %v319_v37 = vld [vmem:[%s1946_s6 + $0x3a8] sm:$0xff] }
  0x42   : > { %440 = vadd.xlane.f32.xlu1 %v439_v42  ;;  %v451_v42 = vsel %vm330_vm0, %v242_v40, 0.0 }
  0x43   : > { %395 = vadd.xlane.f32.xlu0 %v394_v43  ;;  %v406_v43 = vsel %vm330_vm0, %v227_v41, 0.0 }
  0x46   : > { %530 = vadd.xlane.f32.xlu1 %v529_v46  ;;  %v541_v46 = vsel %vm330_vm0, %v272_v44, 0.0 }
  0x47   : > { %485 = vadd.xlane.f32.xlu0 %v484_v47  ;;  %v496_v47 = vsel %vm330_vm0, %v257_v45, 0.0 }
  0x4a   : > { %575 = vadd.xlane.f32.xlu1 %v574_v50  ;;  %v631_v50 = vsel %vm330_vm0, %v302_v48, 0.0 }
  0x4b   : > { %572 = vadd.xlane.f32.xlu0 %v571_v51  ;;  %v586_v51 = vsel %vm330_vm0, %v287_v49, 0.0 }
  0x4e   : > { %398 = vadd.xlane.f32.xlu1 %v397_v54  ;;  %v361_v54 = vsel %vm330_vm0, %v212_v52, 0.0 }
  0x4f   : > { %350 = vadd.xlane.f32.xlu0 %v349_v55  ;;  %v676_v55 = vsel %vm330_vm0, %v317_v53, 0.0 }
  0x52   : > { %488 = vadd.xlane.f32.xlu1 %v487_v58  ;;  %v454_v58 = vsel %vm330_vm0, %v243_v56, 0.0 }
  0x53   : > { %443 = vadd.xlane.f32.xlu0 %v442_v59  ;;  %v409_v59 = vsel %vm330_vm0, %v228_v57, 0.0 }
  0x56   : > { %578 = vadd.xlane.f32.xlu1 %v577_v62  ;;  %v544_v62 = vsel %vm330_vm0, %v273_v60, 0.0 }
  0x57   : > { %533 = vadd.xlane.f32.xlu0 %v532_v63  ;;  %v499_v63 = vsel %vm330_vm0, %v258_v61, 0.0 }
  0x5a   : > { %623 = vadd.xlane.f32.xlu1 %v622_v2  ;;  %v634_v2 = vsel %vm330_vm0, %v303_v0, 0.0 }
  0x5b   : > { %620 = vadd.xlane.f32.xlu0 %v619_v3  ;;  %v589_v3 = vsel %vm330_vm0, %v288_v1, 0.0 }
  0x5e   : > { %401 = vadd.xlane.f32.xlu1 %v400_v6  ;;  %v866_v6 = vlaneseq }
  0x5f   : > { %353 = vadd.xlane.f32.xlu0 %v352_v7  ;;  %v364_v7 = vsel %vm330_vm0, %v213_v4, 0.0  ;;  %v290_v4 = vld [vmem:[%s1946_s6 + $0x2c0] sm:$0xff] }
  0x62   : > { %491 = vadd.xlane.f32.xlu1 %v490_v10  ;;  %v229_v10 = vld [vmem:[%s1946_s6 + $0xd8] sm:$0xff] }
  0x63   : > { %446 = vadd.xlane.f32.xlu0 %v445_v11  ;;  %v2086_v11 = vand.u32 127, %v866_v6  ;;  %v412_v13 = vsel %vm330_vm0, %v229_v10, 0.0 }
  0x65   : > { %v872_v17 = vadd.s32 4294967288, %v2086_v11  ;;  %v886_v48 = vadd.s32 4294967272, %v2086_v11  ;;  %v893_v5 = vadd.s32 4294967264, %v2086_v11 }
  0x66   : > { %581 = vadd.xlane.f32.xlu1 %v580_v14  ;;  %v2090_v14 = vshrl.u32 %v866_v6, 7 }
  0x67   : > { %536 = vadd.xlane.f32.xlu0 %v535_v15  ;;  %v274_v15 = vld [vmem:[%s1946_s6 + $0x240] sm:$0xff] }
  0x68   : > { %v547_v20 = vsel %vm330_vm0, %v274_v15, 0.0  ;;  %v2103_v24 = vsub.s32 %v872_v17, %v2090_v14  ;;  %v2134_v57 = vsub.s32 %v886_v48, %v2090_v14  ;;  %v2152_v15 = vsub.s32 %v893_v5, %v2090_v14  ;;  %v320_v17 = vld [vmem:[%s1946_s6 + $0x3b0] sm:$0xff] }
  0x6a   : > { %668 = vadd.xlane.f32.xlu1 %v667_v18 }
  0x6b   : > { %626 = vadd.xlane.f32.xlu0 %v625_v19 }
  0x6e   : > { %356 = vadd.xlane.f32.xlu1 %v355_v22  ;;  %v879_v22 = vadd.s32 4294967280, %v2086_v11 }
  0x6f   : > { %671 = vadd.xlane.f32.xlu0 %v670_v23  ;;  %v2100_v23 = vsub.s32 %v2086_v11, %v2090_v14 }
  0x72   : > { %449 = vadd.xlane.f32.xlu1 %v448_v26  ;;  %v289_v26 = vld [vmem:[%s1946_s6 + $0x2b8] sm:$0xff] }
  0x73   : > { %404 = vadd.xlane.f32.xlu0 %v403_v27 }
  0x76   : > { %539 = vadd.xlane.f32.xlu1 %v538_v30  ;;  %v592_v30 = vsel %vm330_vm0, %v289_v26, 0.0 }
  0x77   : > { %494 = vadd.xlane.f32.xlu0 %v493_v31  ;;  %v2110_v31 = vsub.s32 %v879_v22, %v2090_v14  ;;  %v685_v22 = vsel %vm330_vm0, %v320_v17, 0.0 }
  0x7a   : > { %629 = vadd.xlane.f32.xlu1 %v628_v34 }
  0x7b   : > { %584 = vadd.xlane.f32.xlu0 %v583_v35 }
  0x7e   : > { %359 = vadd.xlane.f32.xlu1 %v358_v38 }
  0x7f   : > { %674 = vadd.xlane.f32.xlu0 %v673_v39 }
  0x82   : > { %452 = vadd.xlane.f32.xlu1 %v451_v42  ;;  %v367_v42 = vsel %vm330_vm0, %v214_v36, 0.0 }
  0x83   : > { %407 = vadd.xlane.f32.xlu0 %v406_v43  ;;  %v682_v43 = vsel %vm330_vm0, %v319_v37, 0.0 }
  0x86   : > { %542 = vadd.xlane.f32.xlu1 %v541_v46  ;;  %v245_v46 = vld [vmem:[%s1946_s6 + $0x158] sm:$0xff] }
  0x87   : > { %497 = vadd.xlane.f32.xlu0 %v496_v47  ;;  %v230_v47 = vld [vmem:[%s1946_s6 + $0xe0] sm:$0xff]  ;;  %v460_v53 = vsel %vm330_vm0, %v245_v46, 0.0 }
  0x8a   : > { %632 = vadd.xlane.f32.xlu1 %v631_v50 }
  0x8b   : > { %587 = vadd.xlane.f32.xlu0 %v586_v51 }
  0x8e   : > { %362 = vadd.xlane.f32.xlu1 %v361_v54  ;;  %v415_v54 = vsel %vm330_vm0, %v230_v47, 0.0 }
  0x8f   : > { %677 = vadd.xlane.f32.xlu0 %v676_v55 }
  0x92   : > { %455 = vadd.xlane.f32.xlu1 %v454_v58  ;;  %v275_v58 = vld [vmem:[%s1946_s6 + $0x248] sm:$0xff] }
  0x93   : > { %410 = vadd.xlane.f32.xlu0 %v409_v59  ;;  %v260_v59 = vld [vmem:[%s1946_s6 + $0x1d0] sm:$0xff] }
  0x94   : > { %v505_v0 = vsel %vm330_vm0, %v260_v59, 0.0 }
  0x96   : > { %545 = vadd.xlane.f32.xlu1 %v544_v62 }
  0x97   : > { %500 = vadd.xlane.f32.xlu0 %v499_v63  ;;  %v550_v63 = vsel %vm330_vm0, %v275_v58, 0.0 }
  0x9a   : > { %635 = vadd.xlane.f32.xlu1 %v634_v2 }
  0x9b   : > { %590 = vadd.xlane.f32.xlu0 %v589_v3  ;;  %v305_v3 = vld [vmem:[%s1946_s6 + $0x338] sm:$0xff] }
  0x9c   : > { %v640_v10 = vsel %vm330_vm0, %v305_v3, 0.0 }
  0x9e   : > { %365 = vadd.xlane.f32.xlu1 %v364_v7 }
  0x9f   : > { %680 = vadd.xlane.f32.xlu0 %v679_v8 }
  0xa2   : > { %458 = vadd.xlane.f32.xlu1 %v457_v12  ;;  %v595_v12 = vsel %vm330_vm0, %v290_v4, 0.0 }
  0xa3   : > { %413 = vadd.xlane.f32.xlu0 %v412_v13  ;;  %v381_v18 = vpop.xlane.xlu1 %380 }
  0xa4   : > { %v333_v19 = vpop.xlane.xlu0 %332  ;;  %v980_v32 = vrot.slane %v381_v18, %v2100_v23 }
  0xa5   : > { %v871_v33 = vrot.slane %v333_v19, %v2100_v23 }
  0xa6   : > { %548 = vadd.xlane.f32.xlu1 %v547_v20 }
  0xa7   : > { %503 = vadd.xlane.f32.xlu0 %v502_v21  ;;  %v384_v27 = vpop.xlane.xlu1 %383  ;;  %v370_v21 = vsel %vm330_vm0, %v215_v16, 0.0 }
  0xa8   : > { %v336_v28 = vpop.xlane.xlu0 %335  ;;  %v984_v34 = vrot.slane %v384_v27, %v2103_v24 }
  0xa9   : > { %v876_v35 = vrot.slane %v336_v28, %v2103_v24  ;;  %v246_v28 = vld [vmem:[%s1946_s6 + $0x160] sm:$0xff] }
  0xaa   : > { %v985_v38 = vsel %vm877_vm1, %v984_v34, %v980_v32  ;;  %638 = vadd.xlane.f32.xlu1 %v637_v29  ;;  %v231_v29 = vld [vmem:[%s1946_s6 + $0xe8] sm:$0xff] }
  0xab   : > { %v878_v39 = vsel %vm877_vm1, %v876_v35, %v871_v33  ;;  %593 = vadd.xlane.f32.xlu0 %v592_v30  ;;  %v387_v40 = vpop.xlane.xlu1 %386  ;;  %v463_v35 = vsel %vm330_vm0, %v246_v28, 0.0  ;;  %v418_v36 = vsel %vm330_vm0, %v231_v29, 0.0 }
  0xac   : > { %v339_v41 = vpop.xlane.xlu0 %338  ;;  %v989_v44 = vrot.slane %v387_v40, %v2110_v31  ;;  %v261_v40 = vld [vmem:[%s1946_s6 + $0x1d8] sm:$0xff] }
  0xad   : > { %v883_v45 = vrot.slane %v339_v41, %v2110_v31  ;;  %v900_v41 = vadd.s32 4294967256, %v2086_v11  ;;  %v508_v47 = vsel %vm330_vm0, %v261_v40, 0.0 }
  0xae   : > { %v990_v49 = vsel %vm884_vm2, %v989_v44, %v985_v38  ;;  %368 = vadd.xlane.f32.xlu1 %v367_v42 }
  0xaf   : > { %v885_v50 = vsel %vm884_vm2, %v883_v45, %v878_v39  ;;  %683 = vadd.xlane.f32.xlu0 %v682_v43  ;;  %v432_v51 = vpop.xlane.xlu1 %431  ;;  %v276_v39 = vld [vmem:[%s1946_s6 + $0x250] sm:$0xff] }
  0xb0   : > { %v429_v52 = vpop.xlane.xlu0 %428  ;;  %v1063_v55 = vrot.slane %v432_v51, %v2103_v24  ;;  %v553_v46 = vsel %vm330_vm0, %v276_v39, 0.0  ;;  %v291_v51 = vld [vmem:[%s1946_s6 + $0x2c8] sm:$0xff] }
  0xb1   : > { %v1059_v56 = vrot.slane %v429_v52, %v2100_v23 }
  0xb2   : > { %461 = vadd.xlane.f32.xlu1 %v460_v53 }
  0xb3   : > { %v1064_v60 = vsel %vm877_vm1, %v1063_v55, %v1059_v56  ;;  %416 = vadd.xlane.f32.xlu0 %v415_v54  ;;  %v390_v61 = vpop.xlane.xlu1 %389  ;;  %v598_v56 = vsel %vm330_vm0, %v291_v51, 0.0 }
  0xb4   : > { %v342_v62 = vpop.xlane.xlu0 %341  ;;  %v994_v1 = vrot.slane %v390_v61, %v2134_v57  ;;  %v216_v61 = vld [vmem:[%s1946_s6 + $0x70] sm:$0xff] }
  0xb5   : > { %v890_v2 = vrot.slane %v342_v62, %v2134_v57  ;;  %v321_v62 = vld [vmem:[%s1946_s6 + $0x3b8] sm:$0xff]  ;;  %v373_v3 = vsel %vm330_vm0, %v216_v61, 0.0 }
  0xb6   : > { %v995_v6 = vsel %vm891_vm3, %v994_v1, %v990_v49  ;;  %551 = vadd.xlane.f32.xlu1 %v550_v63  ;;  %v2179_v49 = vsub.s32 %v900_v41, %v2090_v14  ;;  %v688_v4 = vsel %vm330_vm0, %v321_v62, 0.0 }
  0xb7   : > { %v892_v7 = vsel %vm891_vm3, %v890_v2, %v885_v50  ;;  %506 = vadd.xlane.f32.xlu0 %v505_v0  ;;  %v477_v8 = vpop.xlane.xlu1 %476  ;;  %v306_v50 = vld [vmem:[%s1946_s6 + $0x340] sm:$0xff] }
  0xb8   : > { %v435_v9 = vpop.xlane.xlu0 %434  ;;  %v1138_v25 = vrot.slane %v477_v8, %v2100_v23  ;;  %v643_v55 = vsel %vm330_vm0, %v306_v50, 0.0  ;;  %v232_v8 = vld [vmem:[%s1946_s6 + $0xf0] sm:$0xff] }
  0xb9   : > { %v1068_v13 = vrot.slane %v435_v9, %v2110_v31  ;;  %v421_v17 = vsel %vm330_vm0, %v232_v8, 0.0 }
  0xba   : > { %641 = vadd.xlane.f32.xlu1 %v640_v10 }
  0xbb   : > { %v1069_v18 = vsel %vm884_vm2, %v1068_v13, %v1064_v60  ;;  %596 = vadd.xlane.f32.xlu0 %v595_v12  ;;  %v345_v19 = vpop.xlane.xlu1 %344 }
  0xbc   : > { %v480_v20 = vpop.xlane.xlu0 %479  ;;  %v897_v26 = vrot.slane %v345_v19, %v2152_v15 }
  0xbd   : > { %v1142_v27 = vrot.slane %v480_v20, %v2103_v24  ;;  %v277_v20 = vld [vmem:[%s1946_s6 + $0x258] sm:$0xff] }
  0xbe   : > { %v899_v30 = vsel %vm898_vm4, %v897_v26, %v892_v7  ;;  %371 = vadd.xlane.f32.xlu1 %v370_v21  ;;  %v247_v7 = vld [vmem:[%s1946_s6 + $0x168] sm:$0xff]  ;;  %v262_v21 = vld [vmem:[%s1946_s6 + $0x1e0] sm:$0xff]  ;;  %v556_v29 = vsel %vm330_vm0, %v277_v20, 0.0 }
  0xbf   : > { %v1143_v32 = vsel %vm877_vm1, %v1142_v27, %v1138_v25  ;;  %686 = vadd.xlane.f32.xlu0 %v685_v22  ;;  %v438_v33 = vpop.xlane.xlu1 %437  ;;  %v466_v16 = vsel %vm330_vm0, %v247_v7, 0.0  ;;  %v907_v22 = vadd.s32 4294967248, %v2086_v11 }
  0xc0   : > { %v393_v34 = vpop.xlane.xlu0 %392  ;;  %v1073_v37 = vrot.slane %v438_v33, %v2134_v57 }
  0xc1   : > { %v999_v38 = vrot.slane %v393_v34, %v2152_v15  ;;  %v2215_v34 = vsub.s32 %v907_v22, %v2090_v14 }
  0xc2   : > { %v1074_v42 = vsel %vm891_vm3, %v1073_v37, %v1069_v18  ;;  %464 = vadd.xlane.f32.xlu1 %v463_v35  ;;  %v307_v35 = vld [vmem:[%s1946_s6 + $0x348] sm:$0xff] }
  0xc3   : > { %v1000_v43 = vsel %vm898_vm4, %v999_v38, %v995_v6  ;;  %419 = vadd.xlane.f32.xlu0 %v418_v36  ;;  %v525_v44 = vpop.xlane.xlu1 %524  ;;  %v292_v36 = vld [vmem:[%s1946_s6 + $0x2d0] sm:$0xff]  ;;  %v646_v40 = vsel %vm330_vm0, %v307_v35, 0.0 }
  0xc4   : > { %v483_v45 = vpop.xlane.xlu0 %482  ;;  %v1217_v58 = vrot.slane %v525_v44, %v2100_v23  ;;  %v601_v41 = vsel %vm330_vm0, %v292_v36, 0.0  ;;  %v217_v44 = vld [vmem:[%s1946_s6 + $0x78] sm:$0xff] }
  0xc5   : > { %v1147_v48 = vrot.slane %v483_v45, %v2110_v31  ;;  %v322_v45 = vld [vmem:[%s1946_s6 + $0x3c0] sm:$0xff]  ;;  %v376_v51 = vsel %vm330_vm0, %v217_v44, 0.0 }
  0xc6   : > { %554 = vadd.xlane.f32.xlu1 %v553_v46 }
  0xc7   : > { %v1148_v52 = vsel %vm884_vm2, %v1147_v48, %v1143_v32  ;;  %509 = vadd.xlane.f32.xlu0 %v508_v47  ;;  %v348_v53 = vpop.xlane.xlu1 %347 }
  0xc8   : > { %v528_v54 = vpop.xlane.xlu0 %527  ;;  %v904_v59 = vrot.slane %v348_v53, %v2179_v49 }
  0xc9   : > { %v1221_v60 = vrot.slane %v528_v54, %v2103_v24 }
  0xca   : > { %v906_v63 = vsel %vm905_vm5, %v904_v59, %v899_v30  ;;  %644 = vadd.xlane.f32.xlu1 %v643_v55  ;;  %v511_v30 = vsel %vm330_vm0, %v262_v21, 0.0  ;;  %v248_v55 = vld [vmem:[%s1946_s6 + $0x170] sm:$0xff] }
  0xcb   : > { %v1222_v0 = vsel %vm877_vm1, %v1221_v60, %v1217_v58  ;;  %599 = vadd.xlane.f32.xlu0 %v598_v56  ;;  %v441_v1 = vpop.xlane.xlu1 %440  ;;  %v233_v56 = vld [vmem:[%s1946_s6 + $0xf8] sm:$0xff]  ;;  %v469_v62 = vsel %vm330_vm0, %v248_v55, 0.0 }
  0xcc   : > { %v396_v2 = vpop.xlane.xlu0 %395  ;;  %v1078_v5 = vrot.slane %v441_v1, %v2152_v15 }
  0xcd   : > { %v1004_v6 = vrot.slane %v396_v2, %v2179_v49  ;;  %v278_v2 = vld [vmem:[%s1946_s6 + $0x260] sm:$0xff] }
  0xce   : > { %v1079_v9 = vsel %vm898_vm4, %v1078_v5, %v1074_v42  ;;  %374 = vadd.xlane.f32.xlu1 %v373_v3  ;;  %v263_v3 = vld [vmem:[%s1946_s6 + $0x1e8] sm:$0xff] }
  0xcf   : > { %v1005_v10 = vsel %vm905_vm5, %v1004_v6, %v1000_v43  ;;  %689 = vadd.xlane.f32.xlu0 %v688_v4  ;;  %v531_v12 = vpop.xlane.xlu1 %530  ;;  %v914_v4 = vadd.s32 4294967240, %v2086_v11 }
  0xd0   : > { %v486_v13 = vpop.xlane.xlu0 %485  ;;  %v1226_v18 = vrot.slane %v531_v12, %v2110_v31 }
  0xd1   : > { %v1152_v19 = vrot.slane %v486_v13, %v2134_v57 }
  0xd2   : > { %v1227_v25 = vsel %vm884_vm2, %v1226_v18, %v1222_v0  ;;  %467 = vadd.xlane.f32.xlu1 %v466_v16  ;;  %v2250_v16 = vsub.s32 %v914_v4, %v2090_v14  ;;  %v293_v18 = vld [vmem:[%s1946_s6 + $0x2d8] sm:$0xff] }
  0xd3   : > { %v1153_v26 = vsel %vm891_vm3, %v1152_v19, %v1148_v52  ;;  %422 = vadd.xlane.f32.xlu0 %v421_v17  ;;  %v576_v27 = vpop.xlane.xlu1 %575  ;;  %v691_v52 = vsel %vm330_vm0, %v322_v45, 0.0  ;;  %v308_v17 = vld [vmem:[%s1946_s6 + $0x350] sm:$0xff] }
  0xd4   : > { %v573_v28 = vpop.xlane.xlu0 %572  ;;  %v1300_v32 = vrot.slane %v576_v27, %v2103_v24  ;;  %v649_v22 = vsel %vm330_vm0, %v308_v17, 0.0 }
  0xd5   : > { %v1296_v33 = vrot.slane %v573_v28, %v2100_v23  ;;  %v249_v28 = vld [vmem:[%s1946_s6 + $0x178] sm:$0xff] }
  0xd6   : > { %557 = vadd.xlane.f32.xlu1 %v556_v29  ;;  %v323_v29 = vld [vmem:[%s1946_s6 + $0x3c8] sm:$0xff]  ;;  %v472_v36 = vsel %vm330_vm0, %v249_v28, 0.0 }
  0xd7   : > { %v1301_v37 = vsel %vm877_vm1, %v1300_v32, %v1296_v33  ;;  %512 = vadd.xlane.f32.xlu0 %v511_v30  ;;  %v399_v38 = vpop.xlane.xlu1 %398 }
  0xd8   : > { %v351_v39 = vpop.xlane.xlu0 %350  ;;  %v1009_v42 = vrot.slane %v399_v38, %v2215_v34 }
  0xd9   : > { %v911_v43 = vrot.slane %v351_v39, %v2215_v34 }
  0xda   : > { %v1010_v46 = vsel %vm912_vm6, %v1009_v42, %v1005_v10  ;;  %647 = vadd.xlane.f32.xlu1 %v646_v40  ;;  %v514_v10 = vsel %vm330_vm0, %v263_v3, 0.0  ;;  %v279_v40 = vld [vmem:[%s1946_s6 + $0x268] sm:$0xff] }
  0xdb   : > { %v913_v47 = vsel %vm912_vm6, %v911_v43, %v906_v63  ;;  %602 = vadd.xlane.f32.xlu0 %v601_v41  ;;  %v489_v48 = vpop.xlane.xlu1 %488  ;;  %v424_v63 = vsel %vm330_vm0, %v233_v56, 0.0  ;;  %v264_v41 = vld [vmem:[%s1946_s6 + $0x1f0] sm:$0xff] }
  0xdc   : > { %v444_v50 = vpop.xlane.xlu0 %443  ;;  %v1157_v53 = vrot.slane %v489_v48, %v2152_v15 }
  0xdd   : > { %v1083_v54 = vrot.slane %v444_v50, %v2179_v49 }
  0xde   : > { %v1158_v58 = vsel %vm898_vm4, %v1157_v53, %v1153_v26  ;;  %377 = vadd.xlane.f32.xlu1 %v376_v51  ;;  %v309_v51 = vld [vmem:[%s1946_s6 + $0x358] sm:$0xff]  ;;  %v921_v53 = vadd.s32 4294967232, %v2086_v11 }
  0xdf   : > { %v1084_v59 = vsel %vm905_vm5, %v1083_v54, %v1079_v9  ;;  %692 = vadd.xlane.f32.xlu0 %v691_v52  ;;  %v579_v60 = vpop.xlane.xlu1 %578  ;;  %v559_v9 = vsel %vm330_vm0, %v278_v2, 0.0  ;;  %v294_v52 = vld [vmem:[%s1946_s6 + $0x2e0] sm:$0xff] }
  0xe0   : > { %v534_v61 = vpop.xlane.xlu0 %533  ;;  %v1305_v0 = vrot.slane %v579_v60, %v2110_v31  ;;  %v607_v60 = vsel %vm330_vm0, %v294_v52, 0.0 }
  0xe1   : > { %v1231_v1 = vrot.slane %v534_v61, %v2134_v57 }
  0xe2   : > { %v1306_v5 = vsel %vm884_vm2, %v1305_v0, %v1301_v37  ;;  %470 = vadd.xlane.f32.xlu1 %v469_v62  ;;  %v694_v37 = vsel %vm330_vm0, %v323_v29, 0.0  ;;  %v2290_v62 = vsub.s32 %v921_v53, %v2090_v14  ;;  %v324_v0 = vld [vmem:[%s1946_s6 + $0x3d0] sm:$0xff] }
  0xe3   : > { %v1232_v6 = vsel %vm891_vm3, %v1231_v1, %v1227_v25  ;;  %425 = vadd.xlane.f32.xlu0 %v424_v63  ;;  %v624_v7 = vpop.xlane.xlu1 %623  ;;  %v604_v25 = vsel %vm330_vm0, %v293_v18, 0.0  ;;  %v265_v63 = vld [vmem:[%s1946_s6 + $0x1f8] sm:$0xff] }
  0xe4   : > { %v621_v8 = vpop.xlane.xlu0 %620  ;;  %v1379_v12 = vrot.slane %v624_v7, %v2103_v24  ;;  %v520_v4 = vsel %vm330_vm0, %v265_v63, 0.0 }
  0xe5   : > { %v1375_v13 = vrot.slane %v621_v8, %v2100_v23 }
  0xe6   : > { %560 = vadd.xlane.f32.xlu1 %v559_v9  ;;  %v295_v9 = vld [vmem:[%s1946_s6 + $0x2e8] sm:$0xff] }
  0xe7   : > { %v1380_v19 = vsel %vm877_vm1, %v1379_v12, %v1375_v13  ;;  %515 = vadd.xlane.f32.xlu0 %v514_v10  ;;  %v402_v20 = vpop.xlane.xlu1 %401  ;;  %v280_v10 = vld [vmem:[%s1946_s6 + $0x270] sm:$0xff] }
  0xe8   : > { %v354_v21 = vpop.xlane.xlu0 %353  ;;  %v1014_v26 = vrot.slane %v402_v20, %v2250_v16 }
  0xe9   : > { %v918_v27 = vrot.slane %v354_v21, %v2250_v16  ;;  %v325_v21 = vld [vmem:[%s1946_s6 + $0x3d8] sm:$0xff] }
  0xea   : > { %v2262_v30 = vsel %vm919_vm7, %v1014_v26, %v1010_v46  ;;  %650 = vadd.xlane.f32.xlu1 %v649_v22  ;;  %v562_v46 = vsel %vm330_vm0, %v279_v40, 0.0  ;;  %v310_v22 = vld [vmem:[%s1946_s6 + $0x360] sm:$0xff]  ;;  %v700_v29 = vsel %vm330_vm0, %v325_v21, 0.0 }
  0xeb   : > { %v920_v32 = vsel %vm919_vm7, %v918_v27, %v913_v47  ;;  %605 = vadd.xlane.f32.xlu0 %v604_v25  ;;  %v492_v33 = vpop.xlane.xlu1 %491  ;;  %v517_v47 = vsel %vm330_vm0, %v264_v41, 0.0 }
  0xec   : > { %v447_v35 = vpop.xlane.xlu0 %446  ;;  %v1162_v38 = vrot.slane %v492_v33, %v2179_v49 }
  0xed   : > { %v1088_v39 = vrot.slane %v447_v35, %v2215_v34 }
  0xee   : > { %v2272_v42 = vsel %vm905_vm5, %v1162_v38, %v1158_v58  ;;  %473 = vadd.xlane.f32.xlu1 %v472_v36  ;;  %v296_v36 = vld [vmem:[%s1946_s6 + $0x2f0] sm:$0xff]  ;;  %v928_v38 = vadd.s32 4294967224, %v2086_v11 }
  0xef   : > { %v1089_v43 = vsel %vm912_vm6, %v1088_v39, %v1084_v59  ;;  %695 = vadd.xlane.f32.xlu0 %v694_v37  ;;  %v582_v44 = vpop.xlane.xlu1 %581  ;;  %v652_v59 = vsel %vm330_vm0, %v309_v51, 0.0  ;;  %v281_v37 = vld [vmem:[%s1946_s6 + $0x278] sm:$0xff]  ;;  %v1863_v51 = vmov 0.0  }
  0xf0   : > { %v537_v45 = vpop.xlane.xlu0 %536  ;;  %v1310_v48 = vrot.slane %v582_v44, %v2134_v57  ;;  %v568_v44 = vsel %vm330_vm0, %v281_v37, 0.0  ;;  %1725 = vmatprep.subr.mxu0 %v1863_v51  ;;  %1757 = vmatprep.mubr.msk.f32.mxu0 %vm1864_vm11, %v1863_v51 }
  0xf1   : > { %v1236_v50 = vrot.slane %v537_v45, %v2152_v15 }
  0xf2   : > { %v2283_v54 = vsel %vm891_vm3, %v1310_v48, %v1306_v5  ;;  %563 = vadd.xlane.f32.xlu1 %v562_v46  ;;  %v697_v5 = vsel %vm330_vm0, %v324_v0, 0.0  ;;  %v326_v48 = vld [vmem:[%s1946_s6 + $0x3e0] sm:$0xff]  ;;  %v297_v0 = vld [vmem:[%s1946_s6 + $0x2f8] sm:$0xff] }
  0xf3   : > { %v1237_v55 = vsel %vm898_vm4, %v1236_v50, %v1232_v6  ;;  %518 = vadd.xlane.f32.xlu0 %v517_v47  ;;  %v669_v56 = vpop.xlane.xlu1 %668  ;;  %v2336_v47 = vsub.s32 %v928_v38, %v2090_v14  ;;  %v311_v50 = vld [vmem:[%s1946_s6 + $0x368] sm:$0xff] }
  0xf4   : > { %v627_v58 = vpop.xlane.xlu0 %626  ;;  %v1454_v6 = vrot.slane %v669_v56, %v2100_v23  ;;  %v565_v23 = vsel %vm330_vm0, %v280_v10, 0.0  ;;  %v327_v10 = vld [vmem:[%s1946_s6 + $0x3e8] sm:$0xff] }
  0xf5   : > { %v1384_v61 = vrot.slane %v627_v58, %v2110_v31  ;;  %v703_v58 = vsel %vm330_vm0, %v326_v48, 0.0 }
  0xf6   : > { %653 = vadd.xlane.f32.xlu1 %v652_v59  ;;  %v658_v59 = vsel %vm330_vm0, %v311_v50, 0.0 }
  0xf7   : > { %v1385_v1 = vsel %vm884_vm2, %v1384_v61, %v1380_v19  ;;  %608 = vadd.xlane.f32.xlu0 %v607_v60  ;;  %v357_v2 = vpop.xlane.xlu1 %356  ;;  %v610_v19 = vsel %vm330_vm0, %v295_v9, 0.0  ;;  %v729_v60 = vld [vmem:[%s2693_s1 + $0x70] sm:$0xff]  ;;  %v313_v9 = vld [vmem:[%s1946_s6 + $0x378] sm:$0xff] }
  0xf8   : > { %v672_v3 = vpop.xlane.xlu0 %671  ;;  %v925_v7 = vrot.slane %v357_v2, %v2290_v62 }
  0xf9   : > { %v1458_v8 = vrot.slane %v672_v3, %v2103_v24 }
  0xfa   : > { %v927_v12 = vsel %vm926_vm8, %v925_v7, %v920_v32  ;;  %521 = vadd.xlane.f32.xlu1 %v520_v4  ;;  %v655_v32 = vsel %vm330_vm0, %v310_v22, 0.0 }
  0xfb   : > { %v1459_v13 = vsel %vm877_vm1, %v1458_v8, %v1454_v6  ;;  %698 = vadd.xlane.f32.xlu0 %v697_v5  ;;  %v450_v17 = vpop.xlane.xlu1 %449  ;;  %v616_v6 = vsel %vm330_vm0, %v297_v0, 0.0  ;;  %vm1530_vm1 = vcmask 1041409  }
  0xfc   : > { %v405_v18 = vpop.xlane.xlu0 %404  ;;  %v1093_v20 = vrot.slane %v450_v17, %v2250_v16 }
  0xfd   : > { %v1019_v24 = vrot.slane %v405_v18, %v2290_v62  ;;  %v726_v18 = vld [vmem:[%s2693_s1 + $0x58] sm:$0xff] }
  0xfe   : > { %v2311_v25 = vsel %vm919_vm7, %v1093_v20, %v1089_v43  ;;  %611 = vadd.xlane.f32.xlu1 %v610_v19  ;;  %v613_v43 = vsel %vm330_vm0, %v296_v36, 0.0  ;;  %v664_v20 = vsel %vm330_vm0, %v313_v9, 0.0 }
  0xff   : > { %v2315_v26 = vsel %vm926_vm8, %v1019_v24, %v2262_v30  ;;  %566 = vadd.xlane.f32.xlu0 %v565_v23  ;;  %v540_v27 = vpop.xlane.xlu1 %539  ;;  %v706_v24 = vsel %vm330_vm0, %v327_v10, 0.0 }
 0x100   : > { %v495_v28 = vpop.xlane.xlu0 %494  ;;  %v1241_v33 = vrot.slane %v540_v27, %v2179_v49  ;;  %v329_v27 = vld [vmem:[%s1946_s6 + $0x3f8] sm:$0xff] }
 0x101   : > { %v1167_v35 = vrot.slane %v495_v28, %v2215_v34  ;;  %v725_v28 = vld [vmem:[%s2693_s1 + $0x50] sm:$0xff]  ;;  %v712_v37 = vsel %vm330_vm0, %v329_v27, 0.0 }
 0x102   : > { %v2325_v30 = vsel %vm905_vm5, %v1241_v33, %v1237_v55  ;;  %701 = vadd.xlane.f32.xlu1 %v700_v29 }
 0x103   : > { %v2329_v39 = vsel %vm912_vm6, %v1167_v35, %v2272_v42  ;;  %656 = vadd.xlane.f32.xlu0 %v655_v32  ;;  %v630_v40 = vpop.xlane.xlu1 %629  ;;  %v730_v42 = vld [vmem:[%s2693_s1 + $0x78] sm:$0xff] }
 0x104   : > { %v585_v41 = vpop.xlane.xlu0 %584  ;;  %v1389_v45 = vrot.slane %v630_v40, %v2134_v57  ;;  %1726 = vmatpush3.msra.mxu0 %v730_v42  ;;  %v722_v42 = vld [vmem:[%s2693_s1 + $0x38] sm:$0xff] }
 0x105   : > { %v1315_v46 = vrot.slane %v585_v41, %v2152_v15  ;;  %1727 = vmatprep.subr.mxu0 %v1863_v51 }
 0x106   : > { %v2345_v52 = vsel %vm891_vm3, %v1389_v45, %v1385_v1  ;;  %614 = vadd.xlane.f32.xlu1 %v613_v43  ;;  %1728 = vmatpush3.msra.mxu0 %v729_v60  ;;  %v728_v1 = vld [vmem:[%s2693_s1 + $0x68] sm:$0xff] }
 0x107   : > { %v2349_v53 = vsel %vm898_vm4, %v1315_v46, %v2283_v54  ;;  %569 = vadd.xlane.f32.xlu0 %v568_v44  ;;  %v360_v55 = vpop.xlane.xlu1 %359  ;;  %v312_v54 = vld [vmem:[%s1946_s6 + $0x370] sm:$0xff]  ;;  %1729 = vmatprep.subr.mxu0 %v1863_v51  ;;  %v723_v44 = vld [vmem:[%s2693_s1 + $0x40] sm:$0xff]  ;;  %v720_v60 = vld [vmem:[%s2693_s1 + $0x28] sm:$0xff] }
 0x108   : > { %v675_v56 = vpop.xlane.xlu0 %674  ;;  %v932_v61 = vrot.slane %v360_v55, %v2336_v47  ;;  %v661_v5 = vsel %vm330_vm0, %v312_v54, 0.0  ;;  %1730 = vmatpush3.msra.mxu0 %v728_v1  ;;  %v721_v55 = vld [vmem:[%s2693_s1 + $0x30] sm:$0xff]  ;;  %v719_v54 = vld [vmem:[%s2693_s1 + $0x20] sm:$0xff] }
 0x109   : > { %v1463_v63 = vrot.slane %v675_v56, %v2110_v31  ;;  %1731 = vmatprep.subr.mxu0 %v1863_v51 }
 0x10a   : > { %v2365_v2 = vsel %vm933_vm9, %v932_v61, %v927_v12  ;;  %704 = vadd.xlane.f32.xlu1 %v703_v58  ;;  %v727_v12 = vld [vmem:[%s2693_s1 + $0x60] sm:$0xff] }
 0x10b   : > { %v2368_v3 = vsel %vm884_vm2, %v1463_v63, %v1459_v13  ;;  %659 = vadd.xlane.f32.xlu0 %v658_v59  ;;  %v453_v31 = vpop.xlane.xlu1 %452  ;;  %1732 = vmatpush3.msra.mxu0 %v727_v12  ;;  %vm1532_vm2 = vcmask 1042434  }
 0x10c   : > { %v408_v4 = vpop.xlane.xlu0 %407  ;;  %v1098_v7 = vrot.slane %v453_v31, %v2290_v62  ;;  %1733 = vmatprep.subr.mxu0 %v1863_v51  ;;  %v942_v31 = vadd.s32 4294967208, %v2086_v11 }
 0x10d   : > { %v1024_v8 = vrot.slane %v408_v4, %v2336_v47  ;;  %1734 = vmatpush3.msra.mxu0 %v726_v18  ;;  %v718_v4 = vld [vmem:[%s2693_s1 + $0x18] sm:$0xff] }
 0x10e   : > { %v1099_v13 = vsel %vm926_vm8, %v1098_v7, %v2311_v25  ;;  %662 = vadd.xlane.f32.xlu1 %v661_v5  ;;  %v328_v25 = vld [vmem:[%s1946_s6 + $0x3f0] sm:$0xff]  ;;  %1735 = vmatprep.subr.mxu0 %v1863_v51 }
 0x10f   : > { %v1025_v17 = vsel %vm933_vm9, %v1024_v8, %v2315_v26  ;;  %617 = vadd.xlane.f32.xlu0 %v616_v6  ;;  %v543_v19 = vpop.xlane.xlu1 %542  ;;  %v935_v26 = vadd.s32 4294967216, %v2086_v11  ;;  %v709_v36 = vsel %vm330_vm0, %v328_v25, 0.0  ;;  %1736 = vmatpush3.msra.mxu0 %v725_v28  ;;  %v717_v7 = vld [vmem:[%s2693_s1 + $0x10] sm:$0xff]  ;;  %vm975_vm0 = vcmask 1048512  }
 0x110   : > { %v498_v23 = vpop.xlane.xlu0 %497  ;;  %v1246_v21 = vrot.slane %v543_v19, %v2215_v34  ;;  %1737 = vmatprep.subr.mxu0 %v1863_v51 }
 0x111   : > { %v1172_v22 = vrot.slane %v498_v23, %v2250_v16  ;;  %v2409_v41 = vsub.s32 %v935_v26, %v2090_v14  ;;  %v715_v23 = vld [vmem:[%s2693_s1] sm:$0xff] }
 0x112   : > { %v1247_v29 = vsel %vm912_vm6, %v1246_v21, %v2325_v30  ;;  %665 = vadd.xlane.f32.xlu1 %v664_v20  ;;  %v724_v30 = vld [vmem:[%s2693_s1 + $0x48] sm:$0xff] }
 0x113   : > { %v1173_v32 = vsel %vm919_vm7, %v1172_v22, %v2329_v39  ;;  %707 = vadd.xlane.f32.xlu0 %v706_v24  ;;  %v633_v33 = vpop.xlane.xlu1 %632  ;;  %1738 = vmatpush3.msra.mxu0 %v724_v30 }
 0x114   : > { %v588_v35 = vpop.xlane.xlu0 %587  ;;  %v1394_v38 = vrot.slane %v633_v33, %v2152_v15  ;;  %1739 = vmatprep.subr.mxu0 %v1863_v51 }
 0x115   : > { %v1320_v40 = vrot.slane %v588_v35, %v2179_v49  ;;  %1740 = vmatpush3.msra.mxu0 %v723_v44 }
 0x116   : > { %v1395_v39 = vsel %vm898_vm4, %v1394_v38, %v2345_v52  ;;  %713 = vadd.xlane.f32.xlu1 %v712_v37  ;;  %1741 = vmatprep.subr.mxu0 %v1863_v51  ;;  %v949_v38 = vadd.s32 4294967200, %v2086_v11 }
 0x117   : > { %v1321_v43 = vsel %vm905_vm5, %v1320_v40, %v2349_v53  ;;  %710 = vadd.xlane.f32.xlu0 %v709_v36  ;;  %v363_v45 = vpop.xlane.xlu1 %362  ;;  %1742 = vmatpush3.msra.mxu0 %v722_v42 }
 0x118   : > { %v678_v46 = vpop.xlane.xlu0 %677  ;;  %v939_v48 = vrot.slane %v363_v45, %v2409_v41  ;;  %1743 = vmatprep.subr.mxu0 %v1863_v51 }
 0x119   : > { %v1468_v50 = vrot.slane %v678_v46, %v2134_v57  ;;  %1744 = vmatpush3.msra.mxu0 %v721_v55  ;;  %v2494_v46 = vsub.s32 %v949_v38, %v2090_v14 }
 0x11a   : > { %v941_v52 = vsel %vm940_vm10, %v939_v48, %v2365_v2  ;;  %1745 = vmatprep.subr.mxu0 %v1863_v51 }
 0x11b   : > { %v1469_v53 = vsel %vm891_vm3, %v1468_v50, %v2368_v3  ;;  %v456_v57 = vpop.xlane.xlu1 %455  ;;  %1746 = vmatpush3.msra.mxu0 %v720_v60  ;;  %vm1534_vm3 = vcmask 1043459  }
 0x11c   : > { %v411_v56 = vpop.xlane.xlu0 %410  ;;  %v1103_v58 = vrot.slane %v456_v57, %v2336_v47  ;;  %1747 = vmatprep.subr.mxu0 %v1863_v51 }
 0x11d   : > { %v1029_v59 = vrot.slane %v411_v56, %v2409_v41  ;;  %1748 = vmatpush3.msra.mxu0 %v719_v54 }
 0x11e   : > { %v1104_v61 = vsel %vm933_vm9, %v1103_v58, %v1099_v13  ;;  %1749 = vmatprep.subr.mxu0 %v1863_v51  ;;  %v2465_v13 = vsub.s32 %v942_v31, %v2090_v14 }
 0x11f   : > { %v1030_v63 = vsel %vm940_vm10, %v1029_v59, %v1025_v17  ;;  %v546_v0 = vpop.xlane.xlu1 %545  ;;  %1750 = vmatpush3.msra.mxu0 %v718_v4  ;;  %v716_v17 = vld [vmem:[%s2693_s1 + $0x8] sm:$0xff] }
 0x120   : > { %v501_v1 = vpop.xlane.xlu0 %500  ;;  %v1251_v2 = vrot.slane %v546_v0, %v2250_v16  ;;  %1751 = vmatprep.subr.mxu0 %v1863_v51 }
 0x121   : > { %v1177_v3 = vrot.slane %v501_v1, %v2290_v62  ;;  %1752 = vmatpush3.msra.mxu0 %v717_v7 }
 0x122   : > { %v1252_v5 = vsel %vm919_vm7, %v1251_v2, %v1247_v29  ;;  %1753 = vmatprep.subr.mxu0 %v1863_v51 }
 0x123   : > { %v1178_v6 = vsel %vm926_vm8, %v1177_v3, %v1173_v32  ;;  %v636_v8 = vpop.xlane.xlu1 %635  ;;  %1754 = vmatpush3.msra.mxu0 %v716_v17  ;;  %v956_v3 = vadd.s32 4294967192, %v2086_v11 }
 0x124   : > { %v591_v9 = vpop.xlane.xlu0 %590  ;;  %v1399_v10 = vrot.slane %v636_v8, %v2179_v49  ;;  %1755 = vmatprep.subr.mxu0 %v1863_v51 }
 0x125   : > { %v1325_v12 = vrot.slane %v591_v9, %v2215_v34  ;;  %1756 = vmatpush3.msra.mxu0 %v715_v23  ;;  %v2514_v9 = vsub.s32 %v956_v3, %v2090_v14 }
 0x126   : > { %v1400_v18 = vsel %vm905_vm5, %v1399_v10, %v1395_v39 }
 0x127   : > { %v1326_v19 = vsel %vm912_vm6, %v1325_v12, %v1321_v43  ;;  %v366_v20 = vpop.xlane.xlu1 %365 }
 0x128   : > { %v681_v24 = vpop.xlane.xlu0 %680  ;;  %v946_v21 = vrot.slane %v366_v20, %v2465_v13 }
 0x129   : > { %v1473_v22 = vrot.slane %v681_v24, %v2152_v15 }
 0x12a   : > { %v948_v25 = vsel %vm947_vm12, %v946_v21, %v941_v52 }
 0x12b   : > { %v1474_v27 = vsel %vm898_vm4, %v1473_v22, %v1469_v53  ;;  %v459_v26 = vpop.xlane.xlu1 %458  ;;  %vm1536_vm4 = vcmask 1044484  }
 0x12c   : > { %v414_v28 = vpop.xlane.xlu0 %413  ;;  %v1108_v29 = vrot.slane %v459_v26, %v2409_v41 }
 0x12d   : > { %v1034_v32 = vrot.slane %v414_v28, %v2465_v13 }
 0x12e   : > { %v1109_v33 = vsel %vm940_vm10, %v1108_v29, %v1104_v61 }
 0x12f   : > { %v1035_v35 = vsel %vm947_vm12, %v1034_v32, %v1030_v63  ;;  %v549_v36 = vpop.xlane.xlu1 %548 }
 0x130   : > { %v504_v37 = vpop.xlane.xlu0 %503  ;;  %v1256_v15 = vrot.slane %v549_v36, %v2290_v62 }
 0x131   : > { %v1182_v51 = vrot.slane %v504_v37, %v2336_v47 }
 0x132   : > { %v1257_v40 = vsel %vm926_vm8, %v1256_v15, %v1252_v5 }
 0x133   : > { %v1183_v30 = vsel %vm933_vm9, %v1182_v51, %v1178_v6  ;;  %v639_v39 = vpop.xlane.xlu1 %638 }
 0x134   : > { %v594_v43 = vpop.xlane.xlu0 %593  ;;  %v1404_v44 = vrot.slane %v639_v39, %v2215_v34 }
 0x135   : > { %v1330_v45 = vrot.slane %v594_v43, %v2250_v16 }
 0x136   : > { %v1405_v48 = vsel %vm912_vm6, %v1404_v44, %v1400_v18 }
 0x137   : > { %v1331_v50 = vsel %vm919_vm7, %v1330_v45, %v1326_v19  ;;  %v369_v42 = vpop.xlane.xlu1 %368 }
 0x138   : > { %v684_v52 = vpop.xlane.xlu0 %683  ;;  %v953_v53 = vrot.slane %v369_v42, %v2494_v46 }
 0x139   : > { %v1478_v55 = vrot.slane %v684_v52, %v2179_v49 }
 0x13a   : > { %v955_v57 = vsel %vm954_vm13, %v953_v53, %v948_v25 }
 0x13b   : > { %v1479_v56 = vsel %vm905_vm5, %v1478_v55, %v1474_v27  ;;  %v462_v58 = vpop.xlane.xlu1 %461  ;;  %vm1538_vm5 = vcmask 1045509  }
 0x13c   : > { %v417_v59 = vpop.xlane.xlu0 %416  ;;  %v1113_v60 = vrot.slane %v462_v58, %v2465_v13  ;;  %v970_v58 = vadd.s32 4294967176, %v2086_v11 }
 0x13d   : > { %v1039_v61 = vrot.slane %v417_v59, %v2494_v46 }
 0x13e   : > { %v1114_v63 = vsel %vm947_vm12, %v1113_v60, %v1109_v33 }
 0x13f   : > { %v1040_v54 = vsel %vm954_vm13, %v1039_v61, %v1035_v35  ;;  %v552_v0 = vpop.xlane.xlu1 %551  ;;  %v963_v35 = vadd.s32 4294967184, %v2086_v11  ;;  %v2556_v61 = vsub.s32 %v970_v58, %v2090_v14 }
 0x140   : > { %v507_v1 = vpop.xlane.xlu0 %506  ;;  %v1261_v2 = vrot.slane %v552_v0, %v2336_v47 }
 0x141   : > { %v1187_v49 = vrot.slane %v507_v1, %v2409_v41 }
 0x142   : > { %v1262_v31 = vsel %vm933_vm9, %v1261_v2, %v1257_v40 }
 0x143   : > { %v1188_v4 = vsel %vm940_vm10, %v1187_v49, %v1183_v30  ;;  %v642_v5 = vpop.xlane.xlu1 %641  ;;  %v2536_v30 = vsub.s32 %v963_v35, %v2090_v14 }
 0x144   : > { %v597_v6 = vpop.xlane.xlu0 %596  ;;  %v1409_v7 = vrot.slane %v642_v5, %v2250_v16 }
 0x145   : > { %v1335_v8 = vrot.slane %v597_v6, %v2290_v62 }
 0x146   : > { %v1410_v10 = vsel %vm919_vm7, %v1409_v7, %v1405_v48 }
 0x147   : > { %v1336_v12 = vsel %vm926_vm8, %v1335_v8, %v1331_v50  ;;  %v372_v17 = vpop.xlane.xlu1 %371 }
 0x148   : > { %v687_v18 = vpop.xlane.xlu0 %686  ;;  %v960_v19 = vrot.slane %v372_v17, %v2514_v9 }
 0x149   : > { %v1483_v23 = vrot.slane %v687_v18, %v2215_v34 }
 0x14a   : > { %v962_v20 = vsel %vm961_vm14, %v960_v19, %v955_v57 }
 0x14b   : > { %v1484_v24 = vsel %vm912_vm6, %v1483_v23, %v1479_v56  ;;  %v465_v21 = vpop.xlane.xlu1 %464  ;;  %vm1540_vm6 = vcmask 1046534  }
 0x14c   : > { %v420_v22 = vpop.xlane.xlu0 %419  ;;  %v1118_v25 = vrot.slane %v465_v21, %v2494_v46 }
 0x14d   : > { %v1044_v27 = vrot.slane %v420_v22, %v2514_v9 }
 0x14e   : > { %v1119_v26 = vsel %vm954_vm13, %v1118_v25, %v1114_v63 }
 0x14f   : > { %v1045_v28 = vsel %vm961_vm14, %v1044_v27, %v1040_v54  ;;  %v555_v29 = vpop.xlane.xlu1 %554 }
 0x150   : > { %v510_v32 = vpop.xlane.xlu0 %509  ;;  %v1266_v33 = vrot.slane %v555_v29, %v2409_v41 }
 0x151   : > { %v1192_v34 = vrot.slane %v510_v32, %v2465_v13 }
 0x152   : > { %v2530_v36 = vsel %vm940_vm10, %v1266_v33, %v1262_v31 }
 0x153   : > { %v1193_v37 = vsel %vm947_vm12, %v1192_v34, %v1188_v4  ;;  %v645_v15 = vpop.xlane.xlu1 %644 }
 0x154   : > { %v600_v51 = vpop.xlane.xlu0 %599  ;;  %v1414_v38 = vrot.slane %v645_v15, %v2290_v62 }
 0x155   : > { %v1340_v40 = vrot.slane %v600_v51, %v2336_v47 }
 0x156   : > { %v2539_v39 = vsel %vm926_vm8, %v1414_v38, %v1410_v10 }
 0x157   : > { %v2542_v43 = vsel %vm933_vm9, %v1340_v40, %v1336_v12  ;;  %v375_v44 = vpop.xlane.xlu1 %374 }
 0x158   : > { %v690_v45 = vpop.xlane.xlu0 %689  ;;  %v967_v48 = vrot.slane %v375_v44, %v2536_v30 }
 0x159   : > { %v1488_v50 = vrot.slane %v690_v45, %v2250_v16 }
 0x15a   : > { %v969_v42 = vsel %vm968_vm15, %v967_v48, %v962_v20 }
 0x15b   : > { %v2548_v52 = vsel %vm919_vm7, %v1488_v50, %v1484_v24  ;;  %v468_v53 = vpop.xlane.xlu1 %467  ;;  %vm1542_vm7 = vcmask 1047559  }
 0x15c   : > { %v423_v55 = vpop.xlane.xlu0 %422  ;;  %v1123_v8 = vrot.slane %v468_v53, %v2514_v9 }
 0x15d   : > { %v1049_v54 = vrot.slane %v423_v55, %v2536_v30 }
 0x15e   : > { %v1124_v18 = vsel %vm961_vm14, %v1123_v8, %v1119_v26 }
 0x15f   : > { %v558_v57 = vpop.xlane.xlu1 %557  ;;  %v1050_v49 = vsel %vm968_vm15, %v1049_v54, %v1045_v28 }
 0x160   : > { %v513_v56 = vpop.xlane.xlu0 %512  ;;  %v1271_v48 = vrot.slane %v558_v57, %v2465_v13 }
 0x161   : > { %v1197_v25 = vrot.slane %v513_v56, %v2494_v46 }
 0x162   : > { %v1272_v56 = vsel %vm947_vm12, %v1271_v48, %v2530_v36 }
 0x163   : > { %v2551_v59 = vpop.xlane.xlu1 %647  ;;  %v1198_v26 = vsel %vm954_vm13, %v1197_v25, %v1193_v37 }
 0x164   : > { %v2553_v60 = vpop.xlane.xlu0 %602  ;;  %v1419_v36 = vrot.slane %v2551_v59, %v2336_v47 }
 0x166   : > { %v1420_v59 = vsel %vm933_vm9, %v1419_v36, %v2539_v39 }
 0x167   : > { %v378_v63 = vpop.xlane.xlu1 %377 }
 0x168   : > { %v2558_v16 = vpop.xlane.xlu0 %692  ;;  %v974_v0 = vrot.slane %v378_v63, %v2556_v61 }
 0x16a   : > { %v976_v3 = vsel %vm975_vm0, %v974_v0, %v969_v42 }
 0x16b   : > { %v471_v1 = vpop.xlane.xlu1 %470 }
 0x16c   : > { %v426_v2 = vpop.xlane.xlu0 %425  ;;  %v1128_v10 = vrot.slane %v471_v1, %v2536_v30  ;;  %v1345_v1 = vrot.slane %v2553_v60, %v2409_v41 }
 0x16d   : > { %v1054_v11 = vrot.slane %v426_v2, %v2556_v61 }
 0x16e   : > { %v1129_v23 = vsel %vm968_vm15, %v1128_v10, %v1124_v18  ;;  %v1346_v8 = vsel %vm940_vm10, %v1345_v1, %v2542_v43  ;;  %v1493_v43 = vrot.slane %v2558_v16, %v2290_v62 }
 0x16f   : > { %v1055_v14 = vsel %vm975_vm0, %v1054_v11, %v1050_v49  ;;  %v561_v4 = vpop.xlane.xlu1 %560 }
 0x170   : > { %v1531_v31 = vsel %vm1530_vm1, %v1055_v14, %v976_v3  ;;  %v516_v5 = vpop.xlane.xlu0 %515  ;;  %v1276_v50 = vrot.slane %v561_v4, %v2494_v46 }
 0x171   : > { %v1202_v29 = vrot.slane %v516_v5, %v2514_v9 }
 0x172   : > { %v1277_v58 = vsel %vm954_vm13, %v1276_v50, %v1272_v56  ;;  %v1702_v56 = vld [vmem:[%s2694_s2] ss:$0 sm:$0xff] }
 0x173   : > { %v2566_v6 = vpop.xlane.xlu1 %650  ;;  %v1203_v35 = vsel %vm961_vm14, %v1202_v29, %v1198_v26 }
 0x174   : > { %v606_v7 = vpop.xlane.xlu0 %605  ;;  %v1424_v60 = vrot.slane %v2566_v6, %v2409_v41 }
 0x175   : > { %v1350_v11 = vrot.slane %v606_v7, %v2465_v13 }
 0x177   : > { %v474_v12 = vpop.xlane.xlu1 %473  ;;  %v1351_v10 = vsel %vm947_vm12, %v1350_v11, %v1346_v8 }
 0x178   : > { %v2570_v17 = vpop.xlane.xlu0 %695  ;;  %v1133_v19 = vrot.slane %v474_v12, %v2556_v61 }
 0x179   : > { %v1498_v39 = vrot.slane %v2570_v17, %v2336_v47  ;;  %v1494_v47 = vsel %vm926_vm8, %v1493_v43, %v2548_v52 }
 0x17a   : > { %v1134_v20 = vsel %vm975_vm0, %v1133_v19, %v1129_v23 }
 0x17b   : > { %v1533_v24 = vsel %vm1532_vm2, %v1134_v20, %v1531_v31  ;;  %v564_v21 = vpop.xlane.xlu1 %563 }
 0x17c   : > { %v519_v22 = vpop.xlane.xlu0 %518  ;;  %v1281_v53 = vrot.slane %v564_v21, %v2514_v9 }
 0x17d   : > { %v1207_v32 = vrot.slane %v519_v22, %v2536_v30  ;;  %v1425_v22 = vsel %vm940_vm10, %v1424_v60, %v1420_v59 }
 0x17e   : > { %v1282_v0 = vsel %vm961_vm14, %v1281_v53, %v1277_v58 }
 0x17f   : > { %v654_v27 = vpop.xlane.xlu1 %653  ;;  %v1208_v51 = vsel %vm968_vm15, %v1207_v32, %v1203_v35 }
 0x180   : > { %v609_v28 = vpop.xlane.xlu0 %608  ;;  %v1429_v12 = vrot.slane %v654_v27, %v2465_v13 }
 0x181   : > { %v1355_v3 = vrot.slane %v609_v28, %v2494_v46 }
 0x182   : > { %v1430_v28 = vsel %vm947_vm12, %v1429_v12, %v1425_v22 }
 0x183   : > { %v522_v33 = vpop.xlane.xlu1 %521  ;;  %v1356_v18 = vsel %vm954_vm13, %v1355_v3, %v1351_v10 }
 0x184   : > { %v2580_v34 = vpop.xlane.xlu0 %698  ;;  %v1212_v15 = vrot.slane %v522_v33, %v2556_v61 }
 0x185   : > { %v1503_v62 = vrot.slane %v2580_v34, %v2409_v41  ;;  %v1499_v34 = vsel %vm933_vm9, %v1498_v39, %v1494_v47 }
 0x186   : > { %v1213_v38 = vsel %vm975_vm0, %v1212_v15, %v1208_v51 }
 0x187   : > { %v1535_v40 = vsel %vm1534_vm3, %v1213_v38, %v1533_v24  ;;  %v612_v44 = vpop.xlane.xlu1 %611  ;;  %v1504_v38 = vsel %vm940_vm10, %v1503_v62, %v1499_v34 }
 0x188   : > { %v567_v45 = vpop.xlane.xlu0 %566  ;;  %v1360_v5 = vrot.slane %v612_v44, %v2514_v9 }
 0x189   : > { %v1286_v55 = vrot.slane %v567_v45, %v2536_v30 }
 0x18a   : > { %v1361_v6 = vsel %vm961_vm14, %v1360_v5, %v1356_v18 }
 0x18b   : > { %v702_v37 = vpop.xlane.xlu1 %701  ;;  %v1287_v2 = vsel %vm968_vm15, %v1286_v55, %v1282_v0 }
 0x18c   : > { %v657_v42 = vpop.xlane.xlu0 %656  ;;  %v1508_v29 = vrot.slane %v702_v37, %v2465_v13 }
 0x18d   : > { %v1434_v19 = vrot.slane %v657_v42, %v2494_v46 }
 0x18e   : > { %v1509_v44 = vsel %vm947_vm12, %v1508_v29, %v1504_v38 }
 0x18f   : > { %v615_v63 = vpop.xlane.xlu1 %614  ;;  %v1435_v32 = vsel %vm954_vm13, %v1434_v19, %v1430_v28 }
 0x190   : > { %v570_v54 = vpop.xlane.xlu0 %569  ;;  %v1365_v7 = vrot.slane %v615_v63, %v2536_v30 }
 0x191   : > { %v1291_v57 = vrot.slane %v570_v54, %v2556_v61 }
 0x192   : > { %v1366_v25 = vsel %vm968_vm15, %v1365_v7, %v1361_v6 }
 0x193   : > { %v1292_v49 = vsel %vm975_vm0, %v1291_v57, %v1287_v2  ;;  %v705_v31 = vpop.xlane.xlu1 %704 }
 0x194   : > { %v1537_v14 = vsel %vm1536_vm4, %v1292_v49, %v1535_v40  ;;  %v660_v4 = vpop.xlane.xlu0 %659  ;;  %v1513_v17 = vrot.slane %v705_v31, %v2494_v46 }
 0x195   : > { %v1439_v24 = vrot.slane %v660_v4, %v2514_v9 }
 0x196   : > { %v1514_v48 = vsel %vm954_vm13, %v1513_v17, %v1509_v44 }
 0x197   : > { %v663_v23 = vpop.xlane.xlu1 %662  ;;  %v1440_v15 = vsel %vm961_vm14, %v1439_v24, %v1435_v32 }
 0x198   : > { %v618_v20 = vpop.xlane.xlu0 %617  ;;  %v1444_v27 = vrot.slane %v663_v23, %v2536_v30 }
 0x199   : > { %v1370_v21 = vrot.slane %v618_v20, %v2556_v61 }
 0x19a   : > { %v1445_v13 = vsel %vm968_vm15, %v1444_v27, %v1440_v15 }
 0x19b   : > { %v1371_v16 = vsel %vm975_vm0, %v1370_v21, %v1366_v25  ;;  %v666_v26 = vpop.xlane.xlu1 %665 }
 0x19c   : > { %v708_v33 = vpop.xlane.xlu0 %707  ;;  %v1539_v35 = vsel %vm1538_vm5, %v1371_v16, %v1537_v14  ;;  %v1449_v41 = vrot.slane %v666_v26, %v2556_v61 }
 0x19d   : > { %v1518_v51 = vrot.slane %v708_v33, %v2514_v9 }
 0x19e   : > { %v1450_v40 = vsel %vm975_vm0, %v1449_v41, %v1445_v13 }
 0x19f   : > { %v714_v45 = vpop.xlane.xlu1 %713  ;;  %v1541_v46 = vsel %vm1540_vm6, %v1450_v40, %v1539_v35  ;;  %v1519_v42 = vsel %vm961_vm14, %v1518_v51, %v1514_v48 }
 0x1a0   : > { %v711_v52 = vpop.xlane.xlu0 %710  ;;  %v1528_v37 = vrot.slane %v714_v45, %v2556_v61 }
 0x1a1   : > { %v1523_v50 = vrot.slane %v711_v52, %v2536_v30  ;;  %v1617_v30 = vstv %s1615_s29 }
 0x1a3   : > { %v1524_v9 = vsel %vm968_vm15, %v1523_v50, %v1519_v42 }
 0x1a4   : > { %v1529_v53 = vsel %vm975_vm0, %v1528_v37, %v1524_v9 }
 0x1a5   : > { %v1543_v55 = vsel %vm1542_vm7, %v1529_v53, %v1541_v46 }
 0x1a6   : > { %1758 = vmatmul.mubr.f32.vlgmr.msra.gmra.mxu0 %v1543_v55 }
 0x266   : > { %v1611_v58 = vpop.f32.mrf.mxu0 }
 0x267   : > { %v1612_v61 = vadd.f32 %v1702_v56, %v1611_v58 }
 0x268   : > { %v1759_v63 = vpop.f32.mrf.mxu0 }
 0x269   : > { %vm1616_vm8 = vcmp.ge.f32.partialorder %v1612_v61, 0.0  ;;  %v1618_v54 = vmul.f32 %v1617_v30, %v1612_v61 }
 0x26b   : > { %v1619_v0 = vsel %vm1616_vm8, %v1612_v61, %v1618_v54 }
 0x26c   : > { %1620 = vst [vmem:[%s194_s9] sm:$0xff] %v1619_v0 }
 0x26d   : > { %1814 = shalt.err (!%p1811_p3)
}
 0x26e   : > { %s1815_s23 = scalar_lea.hbm %s2657_s13, 128  ;;  %s1819_s29 = scalar_lea.hbm %s2696_s4, 256 }
 0x26f   : > { %p1816_p4 = scmp.ne.s32.totalorder %s2657_s13, %s1815_s23  ;;  %p1820_p9 = scmp.lt.s32.totalorder %s2657_s13, %s2696_s4 }
 0x270   : > { %p1821_p10 = scmp.lt.s32.totalorder %s1819_s29, %s1815_s23 }
 0x271   : > { %p1817_p7 = pnand %p1816_p4, %p1932_p5 }
 0x272   : > { %p1822_p11 = por %p1821_p10, %p1820_p9 }
 0x273   : > { %p1818_p8 = pneg %p1817_p7 }
 0x275   : > { %p1823_p12 = pnand %p1822_p11, %p1818_p8 }
 0x277   : > { %1826 = shalt.err (!%p1823_p12)
}
 0x278   : > { %1760 = dma.vmem_to_hbm [thread:$0]  (%p1932_p5), %s1636_s10, 128, %s2657_s13, %s1622_s14  }
 0x279 PF: > { %p1766_p13 = scmp.ge.s32.totalorder %s1861_s20, 2  ;;  %s1647_s6 = sand.u32 1, %s1849_s17  }
 0x27a   : > { %s1648_s7 = scalar_lea.sflag [#allocation4], %s1647_s6 }
 0x27b   : > { %p1763_p0 = pnand %p1766_p13, %p1936_p6 }
 0x27d   : > { %p1764_p1 = pneg %p1763_p0 }
 0x27f   : > { %1844 = dma.done.wait (%p1764_p1), %s1648_s7, 128  }
 0x280   : > { %1846 = vsyncadd (%p1764_p1), %s1648_s7, 4294967168  ;;  %p15_p2 = scmp.ge.s32.totalorder %s1919_s22, 4   ;;  %s2699_s17 = smov %s1853_s18 }
 0x281   : > { %s2700_s18 = smov %s1857_s19  ;;  %s2701_s19 = smov %s1930_s25 }
 0x282   : > { %s2702_s20 = smov %s1919_s22  ;;  %17 = sbr.rel (!%p15_p2) target bundleno = 5 (0x5), region = 71 }
 0x287   :  { %1653 = vsyncpa [#allocation4], 1 }
 0x288   :  { %1655 = vsyncpa [#allocation4 + $0x1], 1 }

</bundles_post_ra>
